<compile_context>
chip_gen: v7x
topology: tpu7x:2x2x1
jax: 0.10.0
libtpu: 0.0.40
codegen_flags: <defaults>
</compile_context>

<pallas_src>
import jax
import jax.numpy as jnp
from jax import lax
from jax.experimental import pallas as pl
from jax.experimental.pallas import tpu as pltpu


def _cam_attention_kernel(x_ref, attn_ref, acc_ref):
    """Accumulate energy = X @ X^T over HW tiles; softmax on the last tile."""
    k = pl.program_id(1)

    @pl.when(k == 0)
    def _():
        acc_ref[...] = jnp.zeros_like(acc_ref)

    x_t = x_ref[0]  # (C, TK) f32
    # energy += x_t @ x_t^T (contract the lane/HW axis of both operands).
    acc_ref[...] += lax.dot_general(
        x_t, x_t, (((1,), (1,)), ((), ())),
        preferred_element_type=jnp.float32)

    @pl.when(k == pl.num_programs(1) - 1)
    def _():
        energy = acc_ref[...]                                          # (C, C)
        energy_new = jnp.max(energy, axis=-1, keepdims=True) - energy
        m = jnp.max(energy_new, axis=-1, keepdims=True)
        p = jnp.exp(energy_new - m)
        inv = pl.reciprocal(jnp.sum(p, axis=-1, keepdims=True), approx=True)
        attn_ref[0] = (p * inv).astype(attn_ref.dtype)


def _cam_apply_kernel(attn_ref, x_ref, gamma_ref, out_ref):
    """out_tile = gamma * (attention @ x_tile) + x_tile."""
    attn = attn_ref[0]                                    # (C, C)  bf16
    x_t = x_ref[0]                                        # (C, TK) f32
    out = jnp.dot(attn, x_t.astype(jnp.bfloat16),
                  preferred_element_type=jnp.float32)     # (C, TK) f32
    gamma = gamma_ref[0]                                  # scalar from SMEM
    out_ref[0] = gamma * out + x_t


def _pick_hw_tile(hw, target):
    """Largest multiple of 128 that divides hw and is <= target; else hw."""
    t = (min(target, hw) // 128) * 128
    while t >= 128:
        if hw % t == 0:
            return t
        t -= 128
    return hw


def _vmem_limit(tile_bytes):
    # tiles + 4 MiB headroom, clamped to stay safe on all generations (v7x: 64 MiB physical).
    return int(min(max(tile_bytes + (4 << 20), 16 << 20), 40 << 20))


def channel_att_forward(x_nchw, gamma, *, tk_target=512):
    """Channel_ATT forward.  x: (B, C, H, W) f32, gamma: (1,) f32 -> (B, C, H, W)."""
    B, C, H, W = x_nchw.shape
    HW = H * W
    tk = _pick_hw_tile(HW, tk_target)
    n_k = HW // tk

    # CAM's .view(B, C, -1) is a pure reshape: channels on sublanes, HW on lanes.
    x_flat = x_nchw.reshape(B, C, HW)

    # ---- kernel 1: attention matrix (B, C, C), bf16 ----
    k1_vmem = 2 * C * tk * 4 + 2 * C * C * 2 + C * C * 4
    attn = pl.pallas_call(
        _cam_attention_kernel,
        out_shape=jax.ShapeDtypeStruct((B, C, C), jnp.bfloat16),
        grid=(B, n_k),
        in_specs=[pl.BlockSpec((1, C, tk), lambda b, k: (b, 0, k))],
        out_specs=pl.BlockSpec((1, C, C), lambda b, k: (b, 0, 0)),
        scratch_shapes=[pltpu.VMEM((C, C), jnp.float32)],
        compiler_params=pltpu.CompilerParams(
            dimension_semantics=("parallel", "arbitrary"),
            vmem_limit_bytes=_vmem_limit(k1_vmem)),
    )(x_flat)

    # ---- kernel 2: out = gamma * (attn @ X) + X, tiled over HW ----
    k2_vmem = 2 * C * C * 2 + 2 * C * tk * 4 + 2 * C * tk * 4
    out_flat = pl.pallas_call(
        _cam_apply_kernel,
        out_shape=jax.ShapeDtypeStruct((B, C, HW), jnp.float32),
        grid=(B, n_k),
        in_specs=[
            pl.BlockSpec((1, C, C), lambda b, k: (b, 0, 0)),   # attention (resident)
            pl.BlockSpec((1, C, tk), lambda b, k: (b, 0, k)),  # x tile
            pl.BlockSpec(memory_space=pltpu.MemorySpace.SMEM),  # gamma (scalar)
        ],
        out_specs=pl.BlockSpec((1, C, tk), lambda b, k: (b, 0, k)),
        compiler_params=pltpu.CompilerParams(
            dimension_semantics=("parallel", "parallel"),
            vmem_limit_bytes=_vmem_limit(k2_vmem)),
    )(attn, x_flat, gamma)

    return out_flat.reshape(B, C, H, W)


def channel_att_reference(x, gamma):
    """Plain-JAX reference mirroring the PyTorch CAM_Module forward exactly."""
    B, C, H, W = x.shape
    xf = x.reshape(B, C, H * W)
    energy = jnp.einsum('bck,bdk->bcd', xf, xf)
    energy_new = jnp.max(energy, axis=-1, keepdims=True) - energy
    attention = jax.nn.softmax(energy_new, axis=-1)
    out = jnp.einsum('bcd,bdk->bck', attention, xf)
    return gamma[0] * out.reshape(B, C, H, W) + x


if __name__ == "__main__":
    B, C, H, W = 2, 32, 16, 16   # HW = 256 -> two 128-wide K tiles with tk_target=128

    key = jax.random.PRNGKey(0)
    x = jax.random.normal(key, (B, C, H, W), jnp.float32)
    # NOTE: the PyTorch module initializes gamma to 0 (output == input exactly);
    # use a nonzero deterministic gamma so the attention path is exercised.
    gamma = jnp.full((1,), 0.1, jnp.float32)

    out = channel_att_forward(x, gamma, tk_target=128)
    jax.block_until_ready(out)

    ref = channel_att_reference(x, gamma)
    assert out.shape == (B, C, H, W), out.shape
    max_err = float(jnp.abs(out - ref).max())
    # bf16 value matmul + approx reciprocal -> loosened tolerance vs the f32 reference.
    assert jnp.allclose(out, ref, atol=2e-2, rtol=2e-2), max_err

    print("KERNEL_OK")
</pallas_src>

<mosaic_0001>
module attributes {stable_mosaic.version = 11 : i64} {
  func.func @_cam_attention_kernel(%arg0: i32, %arg1: i32, %arg2: memref<1x32x128xf32, #tpu.memory_space<vmem>>, %arg3: memref<1x32x32xbf16, #tpu.memory_space<vmem>>, %arg4: memref<32x32xf32, #tpu.memory_space<vmem>>) attributes {dimension_semantics = [#tpu.dimension_semantics<parallel>, #tpu.dimension_semantics<arbitrary>], iteration_bounds = array<i64: 2, 2>, scalar_prefetch = 0 : i64, scratch_operands = 1 : i64, tpu.core_type = #tpu.core_type<tc>, window_params = [{transform_indices = @transform_0, window_bounds = array<i64: 1, 32, 128>}, {transform_indices = @transform_1, window_bounds = array<i64: 1, 32, 32>}]} {
    %c0_i32 = arith.constant 0 : i32
    %0 = arith.cmpi eq, %arg1, %c0_i32 : i32
    %1 = arith.extui %0 : i1 to i32
    %c0_i32_0 = arith.constant 0 : i32
    %2 = arith.cmpi ne, %1, %c0_i32_0 : i32
    scf.if %2 {
      %cst_8 = arith.constant 0.000000e+00 : f32
      %12 = vector.broadcast %cst_8 : f32 to vector<32x32xf32>
      %c0_9 = arith.constant 0 : index
      %c0_10 = arith.constant 0 : index
      %13 = vector.load %arg4[%c0_9, %c0_10] : memref<32x32xf32, #tpu.memory_space<vmem>>, vector<32x32xf32>
      tpu.vector_store %arg4[%c0_9, %c0_10], %12 {strides = array<i32>} : memref<32x32xf32, #tpu.memory_space<vmem>>, vector<32x32xf32>,
    } else {
    }
    %c0 = arith.constant 0 : index
    %c0_1 = arith.constant 0 : index
    %c0_2 = arith.constant 0 : index
    %3 = vector.load %arg2[%c0, %c0_1, %c0_2] : memref<1x32x128xf32, #tpu.memory_space<vmem>>, vector<1x32x128xf32>
    %4 = vector.shape_cast %3 : vector<1x32x128xf32> to vector<32x128xf32>
    %c0_3 = arith.constant 0 : index
    %c0_4 = arith.constant 0 : index
    %5 = vector.load %arg4[%c0_3, %c0_4] : memref<32x32xf32, #tpu.memory_space<vmem>>, vector<32x32xf32>
    %cst = arith.constant dense<0.000000e+00> : vector<32x32xf32>
    %6 = tpu.matmul %4, %4, %cst {dimension_numbers = #tpu.dot_dimension_numbers<[1], [1], [0], [0], [0, 0, 1, 0], [], []>} : vector<32x128xf32>, vector<32x128xf32>, vector<32x32xf32> -> vector<32x32xf32>
    %7 = arith.addf %5, %6 : vector<32x32xf32>
    %c0_5 = arith.constant 0 : index
    %c0_6 = arith.constant 0 : index
    %8 = vector.load %arg4[%c0_5, %c0_6] : memref<32x32xf32, #tpu.memory_space<vmem>>, vector<32x32xf32>
    tpu.vector_store %arg4[%c0_5, %c0_6], %7 {strides = array<i32>} : memref<32x32xf32, #tpu.memory_space<vmem>>, vector<32x32xf32>,
    %c1_i32 = arith.constant 1 : i32
    %9 = arith.cmpi eq, %arg1, %c1_i32 : i32
    %10 = arith.extui %9 : i1 to i32
    %c0_i32_7 = arith.constant 0 : i32
    %11 = arith.cmpi ne, %10, %c0_i32_7 : i32
    scf.if %11 {
      %c0_8 = arith.constant 0 : index
      %c0_9 = arith.constant 0 : index
      %12 = vector.load %arg4[%c0_8, %c0_9] : memref<32x32xf32, #tpu.memory_space<vmem>>, vector<32x32xf32>
      %cst_10 = arith.constant dense<0xFF800000> : vector<32xf32>
      %13 = vector.multi_reduction <maximumf>, %12, %cst_10 [1] : vector<32x32xf32> to vector<32xf32>
      %14 = vector.shape_cast %13 : vector<32xf32> to vector<32x1xf32>
      %15 = vector.broadcast %14 : vector<32x1xf32> to vector<32x32xf32>
      %16 = arith.subf %15, %12 : vector<32x32xf32>
      %cst_11 = arith.constant dense<0xFF800000> : vector<32xf32>
      %17 = vector.multi_reduction <maximumf>, %16, %cst_11 [1] : vector<32x32xf32> to vector<32xf32>
      %18 = vector.shape_cast %17 : vector<32xf32> to vector<32x1xf32>
      %19 = vector.broadcast %18 : vector<32x1xf32> to vector<32x32xf32>
      %20 = arith.subf %16, %19 : vector<32x32xf32>
      %21 = math.exp %20 : vector<32x32xf32>
      %cst_12 = arith.constant dense<0.000000e+00> : vector<32xf32>
      %22 = vector.multi_reduction <add>, %21, %cst_12 [1] : vector<32x32xf32> to vector<32xf32>
      %23 = vector.shape_cast %22 : vector<32xf32> to vector<32x1xf32>
      %24 = tpu.reciprocal %23 {approx = true} : vector<32x1xf32> -> vector<32x1xf32>
      %25 = vector.broadcast %24 : vector<32x1xf32> to vector<32x32xf32>
      %26 = arith.mulf %21, %25 : vector<32x32xf32>
      %27 = arith.truncf %26 : vector<32x32xf32> to vector<32x32xbf16>
      %c0_13 = arith.constant 0 : index
      %c0_14 = arith.constant 0 : index
      %c0_15 = arith.constant 0 : index
      %28 = vector.load %arg3[%c0_13, %c0_14, %c0_15] : memref<1x32x32xbf16, #tpu.memory_space<vmem>>, vector<1x32x32xbf16>
      %29 = vector.shape_cast %28 : vector<1x32x32xbf16> to vector<32x32xbf16>
      %30 = vector.shape_cast %27 : vector<32x32xbf16> to vector<1x32x32xbf16>
      tpu.vector_store %arg3[%c0_13, %c0_14, %c0_15], %30 {strides = array<i32>} : memref<1x32x32xbf16, #tpu.memory_space<vmem>>, vector<1x32x32xbf16>,
    } else {
    }
    return
  }
  func.func @transform_0(%arg0: i32, %arg1: i32) -> (i32, i32, i32) {
    %c0_i32 = arith.constant 0 : i32
    %c0_i32_0 = arith.constant 0 : i32
    return %arg0, %c0_i32, %arg1 : i32, i32, i32
  }
  func.func @transform_1(%arg0: i32, %arg1: i32) -> (i32, i32, i32) {
    %c0_i32 = arith.constant 0 : i32
    %c0_i32_0 = arith.constant 0 : i32
    %c0_i32_1 = arith.constant 0 : i32
    return %arg0, %c0_i32, %c0_i32_0 : i32, i32, i32
  }
}

</mosaic_0001>

<bundles_post_ra>
// kernel: tpu_custom_call.1
= control target key start
LH: loop header
LB: loop body
LE: loop exit
PB: predicated region body
PF: predicated region fallthrough
CT: control target
= control target key end

     0   :  { %6 = vsyncpa [#allocation4], 0  ;;  %s1055_s0 = inlined_call_operand.hbm [shape: f32[2,32,256], index: 0, kind: input, shape index: {}]   ;;  %s1056_s1 = inlined_call_operand.hbm [shape: bf16[2,32,32], index: 1, kind: output, shape index: {}]  }
   0x1   :  { %8 = vsyncpa [#allocation4 + $0x1], 0 }
   0x2   :  { %9 = vsyncpa [#allocation5], 0 }
   0x3   :  { %11 = vsyncpa [#allocation5 + $0x1], 0  ;;  %s806_s6 = smov 0   ;;  %s808_s7 = smov 0  }
   0x4   :  { %s810_s8 = smov 0   ;;  %s812_s9 = smov 0  }
   0x5   :  { %s814_s10 = smov 0   ;;  %s816_s11 = smov 0  }
   0x6   :  { %s818_s12 = smov 0   ;;  %s820_s13 = smov 0  }
   0x7   :  { %s822_s14 = smov 0   ;;  %s824_s15 = smov 0  }
   0x8   :  { %s826_s16 = smov 0  }
   0x9 LB: > { %s450_s17 = sadd.s32 4294967295, %s786_s16   ;;  %s451_s18 = sadd.s32 4294967294, %s786_s16   ;;  %s786_s16 = sphi %s826_s16, %s17_s16   ;;  %s782_s15 = sphi %s824_s15, %s1074_s15   ;;  %s778_s14 = sphi %s822_s14, %s1073_s14   ;;  %s774_s13 = sphi %s820_s13, %s1072_s13   ;;  %s770_s12 = sphi %s818_s12, %s1071_s12   ;;  %s766_s11 = sphi %s816_s11, %s1070_s11   ;;  %s762_s10 = sphi %s814_s10, %s1069_s10   ;;  %s758_s9 = sphi %s812_s9, %s1068_s9   ;;  %s754_s8 = sphi %s810_s8, %s1067_s8   ;;  %s750_s7 = sphi %s808_s7, %s1066_s7   ;;  %s746_s6 = sphi %s806_s6, %s1065_s6  }
   0xa   : > { %s26_s19 = sadd.s32 1, %s778_s14  ;;  %s29_s20 = sadd.s32 1, %s782_s15 }
   0xb   : > { %p27_p0 = scmp.ge.s32.totalorder %s26_s19, 2  ;;  %s38_s21 = sadd.s32 1, %s766_s11 }
   0xc   : > { %p45_p1 = scmp.ne.s32.totalorder %s766_s11, %s762_s10  ;;  %p46_p2 = scmp.eq.s32.totalorder %s786_s16, 0 }
   0xd   : > { %s1076_s19 = smov (%p27_p0, %s26_s19), 0  ;;  %s1078_s20 = smov (!%p27_p0, %s29_s20), %s782_s15 }
   0xe   : > { %s34_s22 = ssub.s32 %s778_s14, %s1076_s19  ;;  %p872_p3 = por %p46_p2, %p45_p1 }
   0xf   : > { %p31_p4 = scmp.ge.s32.totalorder %s1078_s20, 2  ;;  %p51_p5 = scmp.ne.s32.totalorder %s762_s10, %s758_s9 }
  0x10   : > { %p52_p6 = scmp.eq.s32.totalorder %s450_s17, 0  ;;  %s64_s24 = sadd.s32 1, %s754_s8 }
  0x11   : > { %s1080_s20 = smov (%p31_p4, %s1078_s20), 0  ;;  %p74_p8 = scmp.ne.s32.totalorder %s754_s8, %s750_s7 }
  0x12   : > { %p880_p7 = por %p52_p6, %p51_p5  ;;  %s33_s26 = ssub.s32 %s782_s15, %s1080_s20 }
  0x13   : > { %p75_p9 = scmp.eq.s32.totalorder %s450_s17, 3  ;;  %s35_s27 = sor.u32 %s34_s22, %s33_s26 }
  0x14   : > { %p62_p10 = scmp.eq.s32.totalorder %s33_s26, 0  ;;  %p36_p11 = scmp.eq.s32.totalorder %s35_s27, 0 }
  0x15   : > { %p888_p12 = por %p75_p9, %p74_p8  ;;  %p80_p13 = scmp.ne.s32.totalorder %s750_s7, %s746_s6 }
  0x16   : > { %s893_s29 = scalar_select %p62_p10, %s754_s8, %s64_s24  }
  0x17   : > { %s1060_s28 = scalar_select %p888_p12, 1, 0 }
  0x18   : > { %s896_s30 = scalar_select %p36_p11, %s766_s11, %s38_s21  }
  0x19   : > { %p81_p0 = scmp.eq.s32.totalorder %s451_s18, 3  ;;  %p522_p1 = scmp.lt.s32.totalorder %s786_s16, 4 }
  0x1a   : > { %s101_s3 = sand.u32 1, %s766_s11   ;;  %s455_s5 = sshll.u32 %s782_s15, 3 }
  0x1b   : > { %p901_p2 = por %p81_p0, %p80_p13  ;;  %s454_s4 = sshll.u32 %s101_s3, 5 }
  0x1c   : > { %s110_s9 = sadd.s32 %s778_s14, %s455_s5  ;;  %s105_s17 = scalar_lea.vmem [#allocation3], %s454_s4 }
  0x1d   : > { %s1061_s2 = scalar_select %p901_p2, 1, 0 }
  0x1e   : > { %s113_s22 = sshll.u32 %s105_s17, 4  ;;  %s456_s26 = sshll.u32 %s110_s9, 7  ;;  %s908_s22 = int_to_ptr.vmem [resolvable:$true] %s113_s22 }
  0x1f   : > { %s913_s21 = scalar_lea.hbm %s1055_s0, %s456_s26  ;;  %p917_p4 = pnand %p522_p1, %p872_p3 }
  0x20   : > { %s921_s4 = scalar_lea.sflag [#allocation4], %s101_s3  ;;  %s634_s5 = scalar_lea.hbm %s913_s21, 512 }
  0x21   : > { %p635_p5 = scmp.ne.s32.totalorder %s913_s21, %s634_s5  ;;  %p636_p6 = pneg %p917_p4 }
  0x22   : > { %s639_s17 = scalar_lea.hbm %s1055_s0, 2048  ;;  %p640_p3 = scmp.lt.u32.totalorder %s913_s21, %s1055_s0 }
  0x23   : > { %p637_p8 = pnand %p636_p6, %p635_p5  ;;  %p641_p10 = scmp.lt.u32.totalorder %s639_s17, %s634_s5 }
  0x24   : > { %p643_p13 = scmp.lt.u32.totalorder %s634_s5, %s913_s21 }
  0x25   : > { %p638_p9 = pneg %p637_p8  ;;  %p642_p11 = por %p641_p10, %p640_p3 }
  0x27   : > { %p644_p0 = por %p643_p13, %p642_p11 }
  0x29   : > { %p645_p1 = pnand %p644_p0, %p638_p9 }
  0x2b   : > { %648 = shalt.err (!%p645_p1)
}
  0x2c   : > { %s649_s3 = scalar_lea.vmem %s908_s22, 512  ;;  %s788_s27 = smov [#allocation3]  }
  0x2d   : > { %p650_p5 = scmp.ne.s32.totalorder %s908_s22, %s649_s3  ;;  %s654_s23 = sshll.u32 %s788_s27, 4  ;;  %s655_s23 = int_to_ptr.vmem [resolvable:$false] %s654_s23 }
  0x2e   : > { %s656_s9 = scalar_lea.vmem %s655_s23, 1024  ;;  %p657_p12 = scmp.lt.s32.totalorder %s908_s22, %s655_s23 }
  0x2f   : > { %p652_p8 = pnand %p650_p5, %p636_p6  ;;  %p658_p3 = scmp.lt.s32.totalorder %s656_s9, %s649_s3 }
  0x31   : > { %p653_p2 = pneg %p652_p8  ;;  %p659_p10 = por %p658_p3, %p657_p12 }
  0x33   : > { %p660_p11 = pnand %p659_p10, %p653_p2 }
  0x35   : > { %663 = shalt.err (!%p660_p11)
}
  0x36   : > { %s789_s5 = smov 256   ;;  %s790_s17 = smov 128  }
  0x37   : > { %s791_s26 = smov 8   ;;  %p457_p6 = scmp.ge.s32.totalorder %s786_s16, 1 }
  0x38   : > { %517 = dma.hbm_to_vmem [thread:$0]  (!%p917_p4), %s913_s21, 512, %s908_s22, %s921_s4, %s789_s5, %s790_s17, %s791_s26  }
  0x39   : > { %p121_p9 = scmp.lt.s32.totalorder %s786_s16, 5 }
  0x3b   : > { %p122_p13 = pnand %p457_p6, %p121_p9 }
  0x3c   : > { %s127_s24 = sand.u32 (!%p122_p13), 1, %s762_s10  }
  0x3d   : > { %125 = sbr.rel (%p122_p13) target bundleno = 816 (0x330), region = 24  ;;  %s458_s3 = sshll.u32 (!%p122_p13), %s127_s24, 5 }
  0x3e   : > { %s128_s27 = scalar_lea.sflag (!%p122_p13), [#allocation4], %s127_s24  ;;  %s131_s23 = scalar_lea.vmem (!%p122_p13), [#allocation3], %s458_s3 }
  0x44   : > { %737 = dma.done.wait (%p880_p7), %s128_s27, 512  }
  0x45   : > { %739 = vsyncadd (%p880_p7), %s128_s27, 4294966784  ;;  %s147_s9 = sand.u32 1, %s750_s7   ;;  %p460_p12 = scmp.ne.s32.totalorder %s770_s12, 0 }
  0x46   : > { %s459_s22 = sshll.u32 %s147_s9, 4  ;;  %vm154_vm0 = vcmask (!%p460_p12), 261120   ;;  %v792_v0 = vmov (!%p460_p12), 0.0  }
  0x47   : > { %s959_s21 = scalar_lea.vmem [#allocation6], %s459_s22  ;;  %153 = sbr.rel (%p460_p12) target bundleno = 78 (0x4e), region = 32  ;;  %155 = vst.msk [vmem:[#allocation2] sm:$0xff] (!%p460_p12), %vm154_vm0, %v792_v0  ;;  %156 = vst.msk [vmem:[#allocation2 + $0x8] sm:$0xff] (!%p460_p12), %vm154_vm0, %v792_v0 }
  0x48   : > { %157 = vst.msk [vmem:[#allocation2 + $0x10] sm:$0xff] (!%p460_p12), %vm154_vm0, %v792_v0  ;;  %158 = vst.msk [vmem:[#allocation2 + $0x18] sm:$0xff] (!%p460_p12), %vm154_vm0, %v792_v0 }
  0x4e PF: > { %v159_v1 = vld [vmem:[%s131_s23] sm:$0xff]  ;;  %v160_v2 = vld [vmem:[%s131_s23 + $0x8] sm:$0xff]  ;;  %v161_v3 = vld [vmem:[%s131_s23 + $0x10] sm:$0xff]  ;;  %vm256_vm1 = vcmask 261120   ;;  %p461_p7 = scmp.ne.s32.totalorder %s770_s12, 1 }
  0x4f   : > { %v498_v4 = vpack.c.bf16 %v160_v2, %v159_v1  ;;  %v162_v5 = vld [vmem:[%s131_s23 + $0x18] sm:$0xff]  ;;  %492 = vmatprep.mubr.f32.mxu0 %v159_v1  ;;  %495 = vmatprep.mubr.f32.mxu1 %v161_v3  ;;  %v164_v7 = vld [vmem:[#allocation2 + $0x8] sm:$0xff]  ;;  %v163_v9 = vld [vmem:[#allocation2] sm:$0xff]  ;;  %vm345_vm2 = vcmask (!%p461_p7), 257024  }
  0x50   : > { %v502_v6 = vpack.c.bf16 %v162_v5, %v161_v3  ;;  %v166_v8 = vld [vmem:[#allocation2 + $0x18] sm:$0xff]  ;;  %v165_v10 = vld [vmem:[#allocation2 + $0x10] sm:$0xff] }
  0x51   : > { %499 = vmatprep.subr.bf16.mxu0 %v498_v4  ;;  %506 = vmatprep.subr.bf16.mxu1 %v498_v4 }
  0x52   : > { %501 = vmatpush3.bf16.xpose.msra.mxu0 %v498_v4  ;;  %508 = vmatpush3.bf16.xpose.msra.mxu1 %v498_v4 }
  0x53   : > { %503 = vmatprep.subr.bf16.mxu0 %v502_v6  ;;  %507 = vmatprep.subr.bf16.mxu1 %v502_v6 }
  0x5a   : > { %505 = vmatpush3.bf16.xpose.msra.mxu0 %v502_v6  ;;  %509 = vmatpush3.bf16.xpose.msra.mxu1 %v502_v6 }
  0x61   : > { %493 = vmatmul.mubr.f32.vlgmr.msra.gmra.mrb[0].mxu0 %v160_v2  ;;  %496 = vmatmul.mubr.f32.vlgmr.msra.gmra.mrb[0].mxu1 %v162_v5 }
 0x132   : > { %264 = sbr.rel (%p461_p7) target bundleno = 790 (0x316), region = 36 }
 0x134   : > { %v494_v11 = vpop.f32.mrb[0].mxu0  ;;  %v497_v12 = vpop.f32.mrb[0].mxu1 }
 0x135   : > { %v253_v13 = vadd.f32 %v494_v11, %v164_v7  ;;  %v255_v14 = vadd.f32 %v497_v12, %v166_v8  ;;  %v233_v15 = vpop.f32.mrb[1].mxu0  ;;  %v243_v16 = vpop.f32.mrb[1].mxu1 }
 0x136   : > { %v252_v17 = vadd.f32 %v233_v15, %v163_v9  ;;  %v254_v18 = vadd.f32 %v243_v16, %v165_v10 }
 0x137   : > { %258 = vst.msk [vmem:[#allocation2 + $0x8] sm:$0xff] %vm256_vm1, %v253_v13  ;;  %260 = vst.msk [vmem:[#allocation2 + $0x18] sm:$0xff] %vm256_vm1, %v255_v14 }
 0x138   : > { %257 = vst.msk [vmem:[#allocation2] sm:$0xff] %vm256_vm1, %v252_v17  ;;  %259 = vst.msk [vmem:[#allocation2 + $0x10] sm:$0xff] %vm256_vm1, %v254_v18 }
 0x13e   : > { %v266_v21 = vld [vmem:[#allocation2 + $0x8] sm:$0xff]  ;;  %v268_v24 = vld [vmem:[#allocation2 + $0x18] sm:$0xff] }
 0x13f   : > { %v265_v19 = vld [vmem:[#allocation2] sm:$0xff]  ;;  %v267_v20 = vld [vmem:[#allocation2 + $0x10] sm:$0xff]  ;;  %v272_v25 = vsel %vm256_vm1, %v266_v21, -inf  ;;  %v278_v26 = vsel %vm256_vm1, %v268_v24, -inf }
 0x140   : > { %v269_v22 = vsel %vm256_vm1, %v265_v19, -inf  ;;  %v275_v23 = vsel %vm256_vm1, %v267_v20, -inf }
 0x141   : > { %270 = vmax.xlane.f32.xlu0 %v269_v22  ;;  %276 = vmax.xlane.f32.xlu1 %v275_v23 }
 0x145   : > { %273 = vmax.xlane.f32.xlu0 %v272_v25  ;;  %279 = vmax.xlane.f32.xlu1 %v278_v26 }
 0x1ce   : > { %v271_v27 = vpop.xlane.xlu0 %270  ;;  %v277_v28 = vpop.xlane.xlu1 %276 }
 0x1cf   : > { %v281_v29 = vsub.f32 %v271_v27, %v265_v19  ;;  %v283_v30 = vsub.f32 %v277_v28, %v267_v20 }
 0x1d1   : > { %v285_v31 = vsel %vm256_vm1, %v281_v29, -inf  ;;  %v291_v36 = vsel %vm256_vm1, %v283_v30, -inf }
 0x1d2   : > { %286 = vmax.xlane.f32.xlu0 %v285_v31  ;;  %v274_v32 = vpop.xlane.xlu0 %273  ;;  %v280_v33 = vpop.xlane.xlu1 %279 }
 0x1d3   : > { %v282_v34 = vsub.f32 %v274_v32, %v266_v21  ;;  %v284_v35 = vsub.f32 %v280_v33, %v268_v24 }
 0x1d5   : > { %v288_v37 = vsel %vm256_vm1, %v282_v34, -inf  ;;  %v294_v38 = vsel %vm256_vm1, %v284_v35, -inf }
 0x1d6   : > { %292 = vmax.xlane.f32.xlu0 %v291_v36  ;;  %289 = vmax.xlane.f32.xlu1 %v288_v37 }
 0x1da   : > { %295 = vmax.xlane.f32.xlu1 %v294_v38 }
 0x25f   : > { %v287_v39 = vpop.xlane.xlu0 %286 }
 0x260   : > { %v297_v40 = vsub.f32 %v281_v29, %v287_v39 }
 0x262   : > { %v301_v41 = vmul.f32 1.442695, %v297_v40 }
 0x263   : > { %v290_v42 = vpop.xlane.xlu1 %289  ;;  %v293_v43 = vpop.xlane.xlu0 %292 }
 0x264   : > { %618 = vpow2.f32 %v301_v41  ;;  %v298_v44 = vsub.f32 %v282_v34, %v290_v42  ;;  %v299_v45 = vsub.f32 %v283_v30, %v293_v43 }
 0x266   : > { %v303_v46 = vmul.f32 1.442695, %v298_v44  ;;  %v305_v47 = vmul.f32 1.442695, %v299_v45 }
 0x267   : > { %v296_v48 = vpop.xlane.xlu1 %295 }
 0x268   : > { %620 = vpow2.f32 %v303_v46  ;;  %v300_v49 = vsub.f32 %v284_v35, %v296_v48 }
 0x269   : > { %622 = vpow2.f32 %v305_v47 }
 0x26a   : > { %v307_v50 = vmul.f32 1.442695, %v300_v49 }
 0x26c   : > { %624 = vpow2.f32 %v307_v50 }
 0x26e   : > { %v619_v51 = vpop.eup %618 }
 0x26f   : > { %v309_v52 = vsel %vm256_vm1, %v619_v51, 0.0 }
 0x270   : > { %310 = vadd.xlane.f32.xlu0 %v309_v52 }
 0x272   : > { %v621_v53 = vpop.eup %620 }
 0x273   : > { %v623_v54 = vpop.eup %622  ;;  %v312_v55 = vsel %vm256_vm1, %v621_v53, 0.0 }
 0x274   : > { %313 = vadd.xlane.f32.xlu1 %v312_v55  ;;  %v315_v56 = vsel %vm256_vm1, %v623_v54, 0.0 }
 0x275   : > { %316 = vadd.xlane.f32.xlu0 %v315_v56 }
 0x276   : > { %v625_v57 = vpop.eup %624 }
 0x277   : > { %v318_v58 = vsel %vm256_vm1, %v625_v57, 0.0 }
 0x278   : > { %319 = vadd.xlane.f32.xlu1 %v318_v58 }
 0x2fd   : > { %v311_v59 = vpop.xlane.xlu0 %310 }
 0x2fe   : > { %626 = vrcp.f32 %v311_v59 }
 0x301   : > { %v314_v60 = vpop.xlane.xlu1 %313 }
 0x302   : > { %628 = vrcp.f32 %v314_v60  ;;  %v317_v61 = vpop.xlane.xlu0 %316 }
 0x303   : > { %630 = vrcp.f32 %v317_v61 }
 0x305   : > { %v320_v62 = vpop.xlane.xlu1 %319 }
 0x306   : > { %632 = vrcp.f32 %v320_v62 }
 0x308   : > { %v627_v63 = vpop.eup %626 }
 0x309   : > { %v325_v0 = vmul.f32 %v627_v63, %v619_v51 }
 0x30b   : > { %v471_v1 = vpack.c.bf16 %v325_v0, %v325_v0 }
 0x30c   : > { %v629_v2 = vpop.eup %628 }
 0x30d   : > { %v631_v3 = vpop.eup %630  ;;  %346 = vst.msk [vmem:[%s959_s21] sm:$0xf] %vm345_vm2, %v471_v1  ;;  %v326_v4 = vmul.f32 %v629_v2, %v621_v53 }
 0x30e   : > { %v327_v5 = vmul.f32 %v631_v3, %v623_v54 }
 0x30f   : > { %v472_v6 = vpack.c.bf16 %v326_v4, %v326_v4 }
 0x310   : > { %v633_v7 = vpop.eup %632  ;;  %v473_v8 = vpack.c.bf16 %v327_v5, %v327_v5 }
 0x311   : > { %347 = vst.msk [vmem:[%s959_s21 + $0x4] sm:$0xf] %vm345_vm2, %v472_v6  ;;  %v328_v9 = vmul.f32 %v633_v7, %v625_v57 }
 0x312   : > { %348 = vst.msk [vmem:[%s959_s21 + $0x8] sm:$0xf] %vm345_vm2, %v473_v8 }
 0x313   : > { %v474_v10 = vpack.c.bf16 %v328_v9, %v328_v9 }
 0x315   : > { %349 = vst.msk [vmem:[%s959_s21 + $0xc] sm:$0xf] %vm345_vm2, %v474_v10 }
 0x316 PF: > { %s475_s12 = sshll.u32 %s774_s13, 8  ;;  %s364_s5 = sshll.u32 %s959_s21, 4  ;;  %s990_s5 = int_to_ptr.vmem [resolvable:$true] %s364_s5 }
 0x317   : > { %s987_s4 = scalar_lea.hbm %s1056_s1, %s475_s12  ;;  %s994_s17 = scalar_lea.sflag [#allocation5], %s147_s9 }
 0x318   : > { %s664_s26 = scalar_lea.vmem %s990_s5, 256  ;;  %p1063_p4 = scmp.ne.s32.totalorder %s1060_s28, 0 }
 0x319   : > { %p665_p2 = scmp.ne.s32.totalorder %s990_s5, %s664_s26  ;;  %s793_s13 = smov [#allocation6]  }
 0x31a   : > { %s668_s24 = sshll.u32 %s793_s13, 4  ;;  %s669_s24 = int_to_ptr.vmem [resolvable:$false] %s668_s24 }
 0x31b   : > { %p666_p0 = pnand %p665_p2, %p1063_p4  ;;  %s670_s3 = scalar_lea.vmem %s669_s24, 512 }
 0x31c   : > { %p671_p5 = scmp.lt.s32.totalorder %s990_s5, %s669_s24  ;;  %p672_p8 = scmp.lt.s32.totalorder %s670_s3, %s664_s26 }
 0x31d   : > { %p667_p1 = pneg %p666_p0 }
 0x31e   : > { %p673_p3 = por %p672_p8, %p671_p5 }
 0x320   : > { %p674_p10 = pnand %p673_p3, %p667_p1 }
 0x322   : > { %677 = shalt.err (!%p674_p10)
}
 0x323   : > { %s678_s27 = scalar_lea.hbm %s987_s4, 256  ;;  %s682_s22 = scalar_lea.hbm %s1056_s1, 512 }
 0x324   : > { %p679_p11 = scmp.ne.s32.totalorder %s987_s4, %s678_s27  ;;  %p683_p13 = scmp.lt.u32.totalorder %s987_s4, %s1056_s1 }
 0x325   : > { %p684_p12 = scmp.lt.u32.totalorder %s682_s22, %s678_s27  ;;  %p686_p2 = scmp.lt.u32.totalorder %s678_s27, %s987_s4 }
 0x326   : > { %p680_p6 = pnand %p679_p11, %p1063_p4 }
 0x327   : > { %p685_p7 = por %p684_p12, %p683_p13 }
 0x328   : > { %p681_p9 = pneg %p680_p6 }
 0x329   : > { %p687_p0 = por %p686_p2, %p685_p7 }
 0x32b   : > { %p688_p1 = pnand %p687_p0, %p681_p9 }
 0x32d   : > { %691 = shalt.err (!%p688_p1)
}
 0x32e   : > { %s794_s25 = smov 64   ;;  %s795_s18 = smov 4  }
 0x32f   : > { %512 = dma.vmem_to_hbm [thread:$0]  (%p1063_p4), %s990_s5, 256, %s987_s4, %s994_s17, %s794_s25, %s794_s25, %s795_s18  }
 0x330 PF: > { %p523_p5 = scmp.ge.s32.totalorder %s786_s16, 2  ;;  %s379_s26 = sand.u32 1, %s746_s6  }
 0x331   : > { %p1064_p8 = scmp.ne.s32.totalorder %s1061_s2, 0  ;;  %s380_s13 = scalar_lea.sflag [#allocation5], %s379_s26 }
 0x333   : > { %p519_p3 = pnand %p523_p5, %p1064_p8 }
 0x335   : > { %741 = dma.done.wait (!%p519_p3), %s380_s13, 256  }
 0x336   : > { %743 = vsyncadd (!%p519_p3), %s380_s13, 4294967040  ;;  %s17_s16 = sadd.s32 1, %s786_s16   ;;  %s1065_s6 = smov %s750_s7 }
 0x337   : > { %p14_p10 = scmp.ge.s32.totalorder %s17_s16, 6   ;;  %s1066_s7 = smov %s754_s8 }
 0x338   : > { %s1067_s8 = smov %s893_s29  ;;  %s1068_s9 = smov %s762_s10 }
 0x339   : > { %s1069_s10 = smov %s766_s11  ;;  %s1070_s11 = smov %s896_s30 }
 0x33a   : > { %s1071_s12 = smov %s778_s14  ;;  %s1072_s13 = smov %s782_s15 }
 0x33b   : > { %s1073_s14 = smov %s1076_s19  ;;  %s1074_s15 = smov %s1080_s20 }
 0x33c   :  { %16 = sbr.rel (!%p14_p10) target bundleno = 9 (0x9), region = 77 }
 0x343   :  { %385 = vsyncpa [#allocation4], 1 }
 0x344   :  { %387 = vsyncpa [#allocation4 + $0x1], 1 }
 0x345   :  { %388 = vsyncpa [#allocation5], 1 }
 0x346   :  { %390 = vsyncpa [#allocation5 + $0x1], 1 }

</bundles_post_ra>
